<compile_context>
chip_gen: v7x
topology: tpu7x:2x2x1
jax: 0.10.0
libtpu: 0.0.40
codegen_flags: <defaults>
</compile_context>

<pallas_src>
import jax
import jax.numpy as jnp
from jax.experimental import pallas as pl
from jax.experimental.pallas import tpu as pltpu

# ---- problem sizes (small, consistent with the module) ----
N = 16        # nodes per graph (power of two: column index fits in the key's low bits)
F_IN = 8      # input feature dim
HIDDEN = 32   # hidden dim of the GNN
OUT = 4       # output dim (softmax classes)
K = 4         # k of the dynamic kNN graph

# ---- packed-parameter slab layout (f32, HIDDEN lanes wide, sublane-aligned sections) ----
_W1_R0 = 0                       # rows [ 0,  8) : W1  [F_IN, HIDDEN]
_W2_R0 = _W1_R0 + F_IN           # rows [ 8, 40) : W2  [HIDDEN, HIDDEN]
_WO_R0 = _W2_R0 + HIDDEN         # rows [40, 72) : Wo  [HIDDEN, HIDDEN] (cols >= OUT are 0)
_B_R0 = _WO_R0 + HIDDEN          # rows [72, 75) : b1 / b2 / bo (bo cols >= OUT are 0)
_SLAB_ROWS = ((_B_R0 + 3 + 7) // 8) * 8          # pad to a sublane multiple -> 80


# ------------- fully fused kernel: kNN graph + GCN x2 + Linear + Softmax -------------
def _gnn_dynedge_kernel(x_ref, p_ref, out_ref):
    """One graph per grid step: x_ref [N,F] f32, p_ref packed params, out_ref [N,OUT]."""
    x = x_ref[...]                                                   # [N, F] f32
    n = x.shape[0]

    # ---- parameters: one slab, static sublane-aligned slices, weights cast to bf16 ----
    w1 = p_ref[_W1_R0:_W1_R0 + F_IN, :].astype(jnp.bfloat16)        # [F_IN, H]
    w2 = p_ref[_W2_R0:_W2_R0 + HIDDEN, :].astype(jnp.bfloat16)      # [H, H]
    wo = p_ref[_WO_R0:_WO_R0 + HIDDEN, :][:, :OUT].astype(jnp.bfloat16)   # [H, OUT]
    biases = p_ref[_B_R0:_B_R0 + 3, :]                               # [3, H] f32
    b1 = biases[0:1, :]
    b2 = biases[1:2, :]
    bo = biases[2:3, :OUT]

    # ---- pairwise squared distances (f32 Gram on the MXU; no materialized transposes) ----
    gram = jax.lax.dot_general(x, x, (((1,), (1,)), ((), ())),
                               preferred_element_type=jnp.float32)   # [N, N]  x_i . x_j
    sq_i = jnp.sum(x * x, axis=-1, keepdims=True)                    # [N, 1]  ||x_i||^2
    row_i = jax.lax.broadcasted_iota(jnp.int32, (n, n), 0)
    col_i = jax.lax.broadcasted_iota(jnp.int32, (n, n), 1)
    diag = row_i == col_i
    sq_j = jnp.sum(jnp.where(diag, gram, 0.0), axis=0, keepdims=True)  # [1, N] = diag(gram)
    # +1.0 keeps keys strictly positive/normal floats (order preserved); diag excludes self.
    d = jnp.where(diag, 1e30, sq_i + sq_j - 2.0 * gram + 1.0)        # [N, N]

    # ---- kNN selection: packed sort key, ONE lane-min reduction per selected neighbor ----
    # d > 0, so its IEEE-754 bit pattern is monotone; replacing the low log2(N) mantissa
    # bits with the column index makes all keys unique and breaks ties toward smaller col.
    bits = jax.lax.bitcast_convert_type(d, jnp.int32)
    key = jax.lax.bitcast_convert_type(
        jnp.bitwise_or(jnp.bitwise_and(bits, ~(n - 1)), col_i), jnp.float32)
    adj = diag.astype(jnp.float32)                                   # self loops (GCNConv)
    for _ in range(K):
        kmin = jnp.min(key, axis=-1, keepdims=True)                  # [N, 1] single reduce
        sel = jnp.bitwise_and(jax.lax.bitcast_convert_type(kmin, jnp.int32), n - 1)
        hit = col_i == sel                                           # exactly one col / row
        adj = adj + hit.astype(jnp.float32)
        key = jnp.where(hit, jnp.inf, key)                           # never re-selected

    # ---- GCN normalization D^{-1/2}(A+I)D^{-1/2}, folded as row scalings (no dinv.T) ----
    # TODO(synk): row-sum (out-)degree convention; PyG GCNConv on a directed knn_graph
    #             normalizes with in-degree along the edge flow, which may differ.
    deg = jnp.sum(adj, axis=-1, keepdims=True)                       # [N, 1]
    dinv = jax.lax.rsqrt(deg)                                        # [N, 1]
    adj_bf = adj.astype(jnp.bfloat16)

    def gcn(h, w, b):
        hw = jnp.dot(h.astype(jnp.bfloat16), w, preferred_element_type=jnp.float32)
        agg = jnp.dot(adj_bf, (dinv * hw).astype(jnp.bfloat16),
                      preferred_element_type=jnp.float32)
        return dinv * agg + b

    h = gcn(x, w1, b1)                                               # F_IN  -> HIDDEN
    h = gcn(h, w2, b2)                                               # HIDDEN -> HIDDEN

    # ---- output head: Linear(HIDDEN -> OUT) + Softmax(dim=-1) ----
    z = jnp.dot(h.astype(jnp.bfloat16), wo, preferred_element_type=jnp.float32) + bo
    z = z - jnp.max(z, axis=-1, keepdims=True)
    e = jnp.exp(z)
    out_ref[...] = e / jnp.sum(e, axis=-1, keepdims=True)


# ---------------------------------- host-side wrappers ----------------------------------
def pack_params(params):
    """Pack (W1,b1,W2,b2,Wo,bo) into one lane-padded f32 slab -> a single HBM->VMEM DMA."""
    w1, b1, w2, b2, wo, bo = (jnp.asarray(p, jnp.float32) for p in params)
    b1 = b1.reshape(1, HIDDEN)
    b2 = b2.reshape(1, HIDDEN)
    wo_pad = jnp.zeros((HIDDEN, HIDDEN), jnp.float32).at[:, :OUT].set(wo)
    bo_pad = jnp.zeros((1, HIDDEN), jnp.float32).at[:, :OUT].set(bo.reshape(1, OUT))
    tail = jnp.zeros((_SLAB_ROWS - (_B_R0 + 3), HIDDEN), jnp.float32)
    return jnp.concatenate([w1, w2, wo_pad, b1, b2, bo_pad, tail], axis=0)  # [80, HIDDEN]


def _mosaic_params(semantics):
    for name in ("CompilerParams", "TPUCompilerParams"):
        cls = getattr(pltpu, name, None)
        if cls is not None:
            return cls(dimension_semantics=semantics)
    return None


def gnn_dynedge_forward_batched(xb, param_slab):
    """[B, N, F_IN] -> [B, N, OUT]; one fused kernel, one grid step per (independent) graph."""
    b, n, f = xb.shape
    assert n == N and f == F_IN and (n & (n - 1)) == 0
    rows, cols = param_slab.shape
    return pl.pallas_call(
        _gnn_dynedge_kernel,
        out_shape=jax.ShapeDtypeStruct((b, n, OUT), jnp.float32),
        grid=(b,),
        in_specs=[
            pl.BlockSpec((None, n, f), lambda i: (i, 0, 0)),     # one graph per grid step
            pl.BlockSpec((rows, cols), lambda i: (0, 0)),        # params: fetched once
        ],
        out_specs=pl.BlockSpec((None, n, OUT), lambda i: (i, 0, 0)),
        compiler_params=_mosaic_params(("parallel",)),           # v7x: shard graphs on 2 TCs
    )(xb, param_slab)


def gnn_dynedge_forward(x, params):
    """Single-graph equivalent of GNN_DynEdge_wrapper(GNN('GCN', F_IN, OUT, num_layers=2,
    hidden_dim=HIDDEN), k=K, npcs=None).forward(x, _edge_index)."""
    # TODO(synk): scanpy PCA-neighbors branch (npcs != None) and the bipartite
    #             torch_cluster.knn(x[0], x[1], k) call / CPU caching have no clean Pallas
    #             equivalent; implemented as self-kNN over the node features.
    return gnn_dynedge_forward_batched(x[None], pack_params(params))[0]


# ----------------------------------- pure-JAX reference -----------------------------------
def reference_forward(x, params, k=K):
    w1, b1, w2, b2, wo, bo = params
    n = x.shape[0]
    sq = jnp.sum(x * x, axis=-1, keepdims=True)
    d = sq + sq.T - 2.0 * (x @ x.T)
    d = jnp.where(jnp.eye(n, dtype=bool), jnp.inf, d)
    _, nbr = jax.lax.top_k(-d, k)
    adj = jax.nn.one_hot(nbr, n, dtype=jnp.float32).sum(axis=1) + jnp.eye(n, dtype=jnp.float32)
    deg = jnp.sum(adj, axis=-1, keepdims=True)
    dinv = 1.0 / jnp.sqrt(deg)
    a_hat = dinv * adj * dinv.T
    h = a_hat @ (x @ w1) + b1
    h = a_hat @ (h @ w2) + b2
    z = h @ wo + bo
    return jax.nn.softmax(z, axis=-1)


def init_params():
    key = jax.random.PRNGKey(42)
    k1, k2, k3, k4, k5, k6 = jax.random.split(key, 6)
    w1 = 0.1 * jax.random.normal(k1, (F_IN, HIDDEN), jnp.float32)
    b1 = 0.05 * jax.random.normal(k4, (1, HIDDEN), jnp.float32)
    w2 = 0.1 * jax.random.normal(k2, (HIDDEN, HIDDEN), jnp.float32)
    b2 = 0.05 * jax.random.normal(k5, (1, HIDDEN), jnp.float32)
    wo = 0.1 * jax.random.normal(k3, (HIDDEN, OUT), jnp.float32)
    bo = 0.05 * jax.random.normal(k6, (1, OUT), jnp.float32)
    return (w1, b1, w2, b2, wo, bo)


if __name__ == "__main__":
    B = 4
    x = jax.random.normal(jax.random.PRNGKey(0), (B, N, F_IN), jnp.float32)
    params = init_params()
    slab = pack_params(params)

    out = jax.jit(gnn_dynedge_forward_batched)(x, slab)
    out = jax.block_until_ready(out)
    ref = jax.vmap(lambda xx: reference_forward(xx, params))(x)

    assert out.shape == (B, N, OUT)
    assert bool(jnp.allclose(jnp.sum(out, axis=-1), 1.0, atol=1e-3))
    err = float(jnp.max(jnp.abs(out - ref)))
    assert err < 1e-2, f"max |kernel - reference| = {err}"   # bf16 matmuls -> relaxed tol

    # single-graph entry point (matches the module's forward signature semantics)
    out1 = jax.block_until_ready(gnn_dynedge_forward(x[0], params))
    assert bool(jnp.allclose(out1, ref[0], atol=1e-2))

    print("KERNEL_OK")
</pallas_src>

<mosaic_0001>
module attributes {stable_mosaic.version = 11 : i64} {
  func.func @_gnn_dynedge_kernel(%arg0: i32, %arg1: memref<1x16x8xf32, #tpu.memory_space<vmem>>, %arg2: memref<80x32xf32, #tpu.memory_space<vmem>>, %arg3: memref<1x16x4xf32, #tpu.memory_space<vmem>>) attributes {dimension_semantics = [#tpu.dimension_semantics<parallel>], iteration_bounds = array<i64: 4>, scalar_prefetch = 0 : i64, scratch_operands = 0 : i64, tpu.core_type = #tpu.core_type<tc>, window_params = [{transform_indices = @transform_0, window_bounds = array<i64: 1, 16, 8>}, {pipeline_mode = #tpu.pipeline_mode<synchronous>, transform_indices = @transform_1, window_bounds = array<i64: 80, 32>}, {transform_indices = @transform_2, window_bounds = array<i64: 1, 16, 4>}]} {
    %c0 = arith.constant 0 : index
    %c0_0 = arith.constant 0 : index
    %c0_1 = arith.constant 0 : index
    %0 = vector.load %arg1[%c0, %c0_0, %c0_1] : memref<1x16x8xf32, #tpu.memory_space<vmem>>, vector<1x16x8xf32>
    %1 = vector.shape_cast %0 : vector<1x16x8xf32> to vector<16x8xf32>
    %c0_2 = arith.constant 0 : index
    %c0_3 = arith.constant 0 : index
    %2 = vector.load %arg2[%c0_2, %c0_3] : memref<80x32xf32, #tpu.memory_space<vmem>>, vector<8x32xf32>
    %3 = arith.truncf %2 : vector<8x32xf32> to vector<8x32xbf16>
    %c8 = arith.constant 8 : index
    %c0_4 = arith.constant 0 : index
    %4 = vector.load %arg2[%c8, %c0_4] : memref<80x32xf32, #tpu.memory_space<vmem>>, vector<32x32xf32>
    %5 = arith.truncf %4 : vector<32x32xf32> to vector<32x32xbf16>
    %c40 = arith.constant 40 : index
    %c0_5 = arith.constant 0 : index
    %6 = vector.load %arg2[%c40, %c0_5] : memref<80x32xf32, #tpu.memory_space<vmem>>, vector<32x32xf32>
    %7 = vector.extract_strided_slice %6 {offsets = [0, 0], sizes = [32, 4], strides = [1, 1]} : vector<32x32xf32> to vector<32x4xf32>
    %8 = arith.truncf %7 : vector<32x4xf32> to vector<32x4xbf16>
    %c72 = arith.constant 72 : index
    %c0_6 = arith.constant 0 : index
    %9 = vector.load %arg2[%c72, %c0_6] : memref<80x32xf32, #tpu.memory_space<vmem>>, vector<3x32xf32>
    %10 = vector.extract_strided_slice %9 {offsets = [0, 0], sizes = [1, 32], strides = [1, 1]} : vector<3x32xf32> to vector<1x32xf32>
    %11 = vector.extract_strided_slice %9 {offsets = [1, 0], sizes = [1, 32], strides = [1, 1]} : vector<3x32xf32> to vector<1x32xf32>
    %12 = vector.extract_strided_slice %9 {offsets = [2, 0], sizes = [1, 4], strides = [1, 1]} : vector<3x32xf32> to vector<1x4xf32>
    %cst = arith.constant dense<0.000000e+00> : vector<16x16xf32>
    %13 = tpu.matmul %1, %1, %cst {dimension_numbers = #tpu.dot_dimension_numbers<[1], [1], [0], [0], [0, 0, 1, 0], [], []>} : vector<16x8xf32>, vector<16x8xf32>, vector<16x16xf32> -> vector<16x16xf32>
    %14 = arith.mulf %1, %1 : vector<16x8xf32>
    %cst_7 = arith.constant dense<0.000000e+00> : vector<16xf32>
    %15 = vector.multi_reduction <add>, %14, %cst_7 [1] : vector<16x8xf32> to vector<16xf32>
    %16 = vector.shape_cast %15 : vector<16xf32> to vector<16x1xf32>
    %17 = tpu.iota {dimensions = array<i32: 0>} : vector<16x16xi32>
    %18 = tpu.iota {dimensions = array<i32: 1>} : vector<16x16xi32>
    %19 = arith.cmpi eq, %17, %18 : vector<16x16xi32>
    %cst_8 = arith.constant 0.000000e+00 : f32
    %20 = vector.broadcast %cst_8 : f32 to vector<16x16xf32>
    %21 = arith.select %19, %13, %20 : vector<16x16xi1>, vector<16x16xf32>
    %cst_9 = arith.constant dense<0.000000e+00> : vector<16xf32>
    %22 = vector.multi_reduction <add>, %21, %cst_9 [0] : vector<16x16xf32> to vector<16xf32>
    %23 = vector.shape_cast %22 : vector<16xf32> to vector<1x16xf32>
    %24 = vector.broadcast %16 : vector<16x1xf32> to vector<16x16xf32>
    %25 = vector.broadcast %23 : vector<1x16xf32> to vector<16x16xf32>
    %26 = arith.addf %24, %25 : vector<16x16xf32>
    %cst_10 = arith.constant 2.000000e+00 : f32
    %27 = vector.broadcast %cst_10 : f32 to vector<16x16xf32>
    %28 = arith.mulf %27, %13 : vector<16x16xf32>
    %29 = arith.subf %26, %28 : vector<16x16xf32>
    %cst_11 = arith.constant 1.000000e+00 : f32
    %30 = vector.broadcast %cst_11 : f32 to vector<16x16xf32>
    %31 = arith.addf %29, %30 : vector<16x16xf32>
    %cst_12 = arith.constant 1.000000e+30 : f32
    %32 = vector.broadcast %cst_12 : f32 to vector<16x16xf32>
    %33 = arith.select %19, %32, %31 : vector<16x16xi1>, vector<16x16xf32>
    %34 = tpu.bitcast %33 : vector<16x16xf32> -> vector<16x16xi32>
    %c-16_i32 = arith.constant -16 : i32
    %35 = vector.broadcast %c-16_i32 : i32 to vector<16x16xi32>
    %36 = arith.andi %34, %35 : vector<16x16xi32>
    %37 = arith.ori %36, %18 : vector<16x16xi32>
    %38 = tpu.bitcast %37 : vector<16x16xi32> -> vector<16x16xf32>
    %39 = arith.extui %19 : vector<16x16xi1> to vector<16x16xi32>
    %40 = arith.sitofp %39 : vector<16x16xi32> to vector<16x16xf32>
    %cst_13 = arith.constant dense<0x7F800000> : vector<16xf32>
    %41 = vector.multi_reduction <minimumf>, %38, %cst_13 [1] : vector<16x16xf32> to vector<16xf32>
    %42 = vector.shape_cast %41 : vector<16xf32> to vector<16x1xf32>
    %43 = tpu.bitcast %42 : vector<16x1xf32> -> vector<16x1xi32>
    %c15_i32 = arith.constant 15 : i32
    %44 = vector.broadcast %c15_i32 : i32 to vector<16x1xi32>
    %45 = arith.andi %43, %44 : vector<16x1xi32>
    %46 = vector.broadcast %45 : vector<16x1xi32> to vector<16x16xi32>
    %47 = arith.cmpi eq, %18, %46 : vector<16x16xi32>
    %48 = arith.extui %47 : vector<16x16xi1> to vector<16x16xi32>
    %49 = arith.sitofp %48 : vector<16x16xi32> to vector<16x16xf32>
    %50 = arith.addf %40, %49 : vector<16x16xf32>
    %cst_14 = arith.constant 0x7F800000 : f32
    %51 = vector.broadcast %cst_14 : f32 to vector<16x16xf32>
    %52 = arith.select %47, %51, %38 : vector<16x16xi1>, vector<16x16xf32>
    %cst_15 = arith.constant dense<0x7F800000> : vector<16xf32>
    %53 = vector.multi_reduction <minimumf>, %52, %cst_15 [1] : vector<16x16xf32> to vector<16xf32>
    %54 = vector.shape_cast %53 : vector<16xf32> to vector<16x1xf32>
    %55 = tpu.bitcast %54 : vector<16x1xf32> -> vector<16x1xi32>
    %c15_i32_16 = arith.constant 15 : i32
    %56 = vector.broadcast %c15_i32_16 : i32 to vector<16x1xi32>
    %57 = arith.andi %55, %56 : vector<16x1xi32>
    %58 = vector.broadcast %57 : vector<16x1xi32> to vector<16x16xi32>
    %59 = arith.cmpi eq, %18, %58 : vector<16x16xi32>
    %60 = arith.extui %59 : vector<16x16xi1> to vector<16x16xi32>
    %61 = arith.sitofp %60 : vector<16x16xi32> to vector<16x16xf32>
    %62 = arith.addf %50, %61 : vector<16x16xf32>
    %cst_17 = arith.constant 0x7F800000 : f32
    %63 = vector.broadcast %cst_17 : f32 to vector<16x16xf32>
    %64 = arith.select %59, %63, %52 : vector<16x16xi1>, vector<16x16xf32>
    %cst_18 = arith.constant dense<0x7F800000> : vector<16xf32>
    %65 = vector.multi_reduction <minimumf>, %64, %cst_18 [1] : vector<16x16xf32> to vector<16xf32>
    %66 = vector.shape_cast %65 : vector<16xf32> to vector<16x1xf32>
    %67 = tpu.bitcast %66 : vector<16x1xf32> -> vector<16x1xi32>
    %c15_i32_19 = arith.constant 15 : i32
    %68 = vector.broadcast %c15_i32_19 : i32 to vector<16x1xi32>
    %69 = arith.andi %67, %68 : vector<16x1xi32>
    %70 = vector.broadcast %69 : vector<16x1xi32> to vector<16x16xi32>
    %71 = arith.cmpi eq, %18, %70 : vector<16x16xi32>
    %72 = arith.extui %71 : vector<16x16xi1> to vector<16x16xi32>
    %73 = arith.sitofp %72 : vector<16x16xi32> to vector<16x16xf32>
    %74 = arith.addf %62, %73 : vector<16x16xf32>
    %cst_20 = arith.constant 0x7F800000 : f32
    %75 = vector.broadcast %cst_20 : f32 to vector<16x16xf32>
    %76 = arith.select %71, %75, %64 : vector<16x16xi1>, vector<16x16xf32>
    %cst_21 = arith.constant dense<0x7F800000> : vector<16xf32>
    %77 = vector.multi_reduction <minimumf>, %76, %cst_21 [1] : vector<16x16xf32> to vector<16xf32>
    %78 = vector.shape_cast %77 : vector<16xf32> to vector<16x1xf32>
    %79 = tpu.bitcast %78 : vector<16x1xf32> -> vector<16x1xi32>
    %c15_i32_22 = arith.constant 15 : i32
    %80 = vector.broadcast %c15_i32_22 : i32 to vector<16x1xi32>
    %81 = arith.andi %79, %80 : vector<16x1xi32>
    %82 = vector.broadcast %81 : vector<16x1xi32> to vector<16x16xi32>
    %83 = arith.cmpi eq, %18, %82 : vector<16x16xi32>
    %84 = arith.extui %83 : vector<16x16xi1> to vector<16x16xi32>
    %85 = arith.sitofp %84 : vector<16x16xi32> to vector<16x16xf32>
    %86 = arith.addf %74, %85 : vector<16x16xf32>
    %cst_23 = arith.constant dense<0.000000e+00> : vector<16xf32>
    %87 = vector.multi_reduction <add>, %86, %cst_23 [1] : vector<16x16xf32> to vector<16xf32>
    %88 = vector.shape_cast %87 : vector<16xf32> to vector<16x1xf32>
    %89 = math.rsqrt %88 : vector<16x1xf32>
    %90 = arith.truncf %86 : vector<16x16xf32> to vector<16x16xbf16>
    %91 = arith.truncf %1 : vector<16x8xf32> to vector<16x8xbf16>
    %cst_24 = arith.constant dense<0.000000e+00> : vector<16x32xf32>
    %92 = tpu.matmul %91, %3, %cst_24 {dimension_numbers = #tpu.dot_dimension_numbers<[1], [0], [0], [1], [0, 0, 1, 1], [], []>} : vector<16x8xbf16>, vector<8x32xbf16>, vector<16x32xf32> -> vector<16x32xf32>
    %93 = vector.broadcast %89 : vector<16x1xf32> to vector<16x32xf32>
    %94 = arith.mulf %93, %92 : vector<16x32xf32>
    %95 = arith.truncf %94 : vector<16x32xf32> to vector<16x32xbf16>
    %cst_25 = arith.constant dense<0.000000e+00> : vector<16x32xf32>
    %96 = tpu.matmul %90, %95, %cst_25 {dimension_numbers = #tpu.dot_dimension_numbers<[1], [0], [0], [1], [0, 0, 1, 1], [], []>} : vector<16x16xbf16>, vector<16x32xbf16>, vector<16x32xf32> -> vector<16x32xf32>
    %97 = vector.broadcast %89 : vector<16x1xf32> to vector<16x32xf32>
    %98 = arith.mulf %97, %96 : vector<16x32xf32>
    %99 = vector.broadcast %10 : vector<1x32xf32> to vector<16x32xf32>
    %100 = arith.addf %98, %99 : vector<16x32xf32>
    %101 = arith.truncf %100 : vector<16x32xf32> to vector<16x32xbf16>
    %cst_26 = arith.constant dense<0.000000e+00> : vector<16x32xf32>
    %102 = tpu.matmul %101, %5, %cst_26 {dimension_numbers = #tpu.dot_dimension_numbers<[1], [0], [0], [1], [0, 0, 1, 1], [], []>} : vector<16x32xbf16>, vector<32x32xbf16>, vector<16x32xf32> -> vector<16x32xf32>
    %103 = vector.broadcast %89 : vector<16x1xf32> to vector<16x32xf32>
    %104 = arith.mulf %103, %102 : vector<16x32xf32>
    %105 = arith.truncf %104 : vector<16x32xf32> to vector<16x32xbf16>
    %cst_27 = arith.constant dense<0.000000e+00> : vector<16x32xf32>
    %106 = tpu.matmul %90, %105, %cst_27 {dimension_numbers = #tpu.dot_dimension_numbers<[1], [0], [0], [1], [0, 0, 1, 1], [], []>} : vector<16x16xbf16>, vector<16x32xbf16>, vector<16x32xf32> -> vector<16x32xf32>
    %107 = vector.broadcast %89 : vector<16x1xf32> to vector<16x32xf32>
    %108 = arith.mulf %107, %106 : vector<16x32xf32>
    %109 = vector.broadcast %11 : vector<1x32xf32> to vector<16x32xf32>
    %110 = arith.addf %108, %109 : vector<16x32xf32>
    %111 = arith.truncf %110 : vector<16x32xf32> to vector<16x32xbf16>
    %cst_28 = arith.constant dense<0.000000e+00> : vector<16x4xf32>
    %112 = tpu.matmul %111, %8, %cst_28 {dimension_numbers = #tpu.dot_dimension_numbers<[1], [0], [0], [1], [0, 0, 1, 1], [], []>} : vector<16x32xbf16>, vector<32x4xbf16>, vector<16x4xf32> -> vector<16x4xf32>
    %113 = vector.broadcast %12 : vector<1x4xf32> to vector<16x4xf32>
    %114 = arith.addf %112, %113 : vector<16x4xf32>
    %cst_29 = arith.constant dense<0xFF800000> : vector<16xf32>
    %115 = vector.multi_reduction <maximumf>, %114, %cst_29 [1] : vector<16x4xf32> to vector<16xf32>
    %116 = vector.shape_cast %115 : vector<16xf32> to vector<16x1xf32>
    %117 = vector.broadcast %116 : vector<16x1xf32> to vector<16x4xf32>
    %118 = arith.subf %114, %117 : vector<16x4xf32>
    %119 = math.exp %118 : vector<16x4xf32>
    %cst_30 = arith.constant dense<0.000000e+00> : vector<16xf32>
    %120 = vector.multi_reduction <add>, %119, %cst_30 [1] : vector<16x4xf32> to vector<16xf32>
    %121 = vector.shape_cast %120 : vector<16xf32> to vector<16x1xf32>
    %122 = vector.broadcast %121 : vector<16x1xf32> to vector<16x4xf32>
    %123 = arith.divf %119, %122 : vector<16x4xf32>
    %c0_31 = arith.constant 0 : index
    %c0_32 = arith.constant 0 : index
    %c0_33 = arith.constant 0 : index
    %124 = vector.load %arg3[%c0_31, %c0_32, %c0_33] : memref<1x16x4xf32, #tpu.memory_space<vmem>>, vector<1x16x4xf32>
    %125 = vector.shape_cast %124 : vector<1x16x4xf32> to vector<16x4xf32>
    %126 = vector.shape_cast %123 : vector<16x4xf32> to vector<1x16x4xf32>
    tpu.vector_store %arg3[%c0_31, %c0_32, %c0_33], %126 {strides = array<i32>} : memref<1x16x4xf32, #tpu.memory_space<vmem>>, vector<1x16x4xf32>,
    return
  }
  func.func @transform_0(%arg0: i32) -> (i32, i32, i32) {
    %c0_i32 = arith.constant 0 : i32
    %c0_i32_0 = arith.constant 0 : i32
    %c0_i32_1 = arith.constant 0 : i32
    return %arg0, %c0_i32, %c0_i32_0 : i32, i32, i32
  }
  func.func @transform_1(%arg0: i32) -> (i32, i32) {
    %c0_i32 = arith.constant 0 : i32
    %c0_i32_0 = arith.constant 0 : i32
    %c0_i32_1 = arith.constant 0 : i32
    return %c0_i32, %c0_i32_0 : i32, i32
  }
  func.func @transform_2(%arg0: i32) -> (i32, i32, i32) {
    %c0_i32 = arith.constant 0 : i32
    %c0_i32_0 = arith.constant 0 : i32
    %c0_i32_1 = arith.constant 0 : i32
    return %arg0, %c0_i32, %c0_i32_0 : i32, i32, i32
  }
}

</mosaic_0001>

<bundles_post_ra>
// kernel: gnn_dynedge_forward_batched.1
= control target key start
LH: loop header
LB: loop body
LE: loop exit
PB: predicated region body
PF: predicated region fallthrough
CT: control target
= control target key end

     0   :  { %s853_s9 = smov 0   ;;  %s1004_s0 = inlined_call_operand.vmem [shape: f32[4,16,8], index: 0, kind: input, shape index: {}]   ;;  %s1005_s1 = inlined_call_operand.vmem [shape: f32[80,32], index: 1, kind: input, shape index: {}]   ;;  %s1006_s2 = inlined_call_operand.vmem [shape: f32[4,16,4], index: 2, kind: output, shape index: {}]  }
   0x1 LB: > { %s711_s10 = sadd.s32 4294967295, %s834_s9   ;;  %p715_p0 = scmp.ge.s32.totalorder %s834_s9, 1  ;;  %s834_s9 = sphi %s853_s9, %s12_s9  }
   0x2   : > { %p112_p1 = scmp.lt.s32.totalorder %s834_s9, 5 }
   0x4   : > { %p113_p2 = pnand %p715_p0, %p112_p1 }
   0x5   : > { %p134_p3 = scmp.lt.s32.totalorder (!%p113_p2), %s711_s10, 3  ;;  %vm162_vm0 = vcmask (!%p113_p2), 64512   ;;  %v252_v7 = vlaneseq (!%p113_p2)  ;;  %vm261_vm3 = vcmask (!%p113_p2), 130048   ;;  %v836_v42 = vmov (!%p113_p2), 0.0  }
   0x6   : > { %116 = sbr.rel (%p113_p2) target bundleno = 2214 (0x8a6), region = 28  ;;  %vm801_vm1 = vmpackc.low (!%p113_p2), %vm162_vm0, %vm162_vm0  ;;  %766 = vmatprep.subr.bf16.mxu1 (!%p113_p2), %v836_v42  ;;  %vm384_vm9 = vcmask (!%p113_p2), 1043456   ;;  %vm837_vm10 = vmmov (!%p113_p2), 0   ;;  %vm485_vm15 = vcmask (!%p113_p2), 261120  }
   0x7   : > { %v879_v8 = vshrl.u32 (!%p113_p2), %v252_v7, 7  ;;  %v882_v10 = vand.u32 (!%p113_p2), 127, %v252_v7  ;;  %768 = vmatprep.mubr.msk.bf16.mxu1 (!%p113_p2), %vm837_vm10, %v836_v42 }
   0x9   : > { %v254_v9 = vadd.s32 (!%p113_p2), 8, %v879_v8  ;;  %vm257_vm4 = vcmp.eq.s32.totalorder (!%p113_p2), %v879_v8, %v882_v10 }
   0xa   : > { %v724_v45 = vsel (!%p113_p2), %vm257_vm4, 1.0, %v836_v42 }
   0xb   : > { %vm258_vm2 = vcmp.eq.s32.totalorder (!%p113_p2), %v254_v9, %v882_v10 }
   0xc   : > { %v725_v52 = vsel (!%p113_p2), %vm258_vm2, 1.0, %v836_v42 }
   0xd   : > { %s1008_s10 = smov (!%p134_p3, %s711_s10), 3 }
   0xe   : > { %s741_s11 = sshll.u32 %s1008_s10, 4 }
   0xf   : > { %s138_s14 = scalar_lea.vmem %s1004_s0, %s741_s11  ;;  %s143_s12 = scalar_lea.vmem %s1006_s2, %s741_s11 }
  0x10   : > { %v145_v0 = vld [vmem:[%s138_s14] sm:$0xff]  ;;  %v146_v1 = vld [vmem:[%s138_s14 + $0x8] sm:$0xff] }
  0x11   : > { %v871_v2 = vpack.c.bf16 %v146_v1, %v145_v0  ;;  %763 = vmatprep.mubr.msk.f32.mxu0 %vm162_vm0, %v145_v0  ;;  %v244_v3 = vmul.f32 %v145_v0, %v145_v0  ;;  %v245_v4 = vmul.f32 %v146_v1, %v146_v1 }
  0x13   : > { %802 = vmatprep.subr.msk.bf16.mxu0 %vm801_vm1, %v871_v2  ;;  %v246_v5 = vsel %vm162_vm0, %v244_v3, 0.0  ;;  %v249_v6 = vsel %vm162_vm0, %v245_v4, 0.0 }
  0x14   : > { %805 = vmatpush3.bf16.xpose.msk.msra.mxu0 %vm801_vm1, %v871_v2  ;;  %247 = vadd.xlane.f32.xlu0 %v246_v5 }
  0x15   : > { %772 = vmatprep.subr.bf16.mxu0 %v836_v42 }
  0x18   : > { %250 = vadd.xlane.f32.xlu0 %v249_v6  ;;  %v147_v6 = vld [vmem:[%s1005_s1] sm:$0xff] }
  0x19   : > { %v148_v7 = vpack.c.bf16 %v147_v6, %v147_v6  ;;  %v155_v6 = vld [vmem:[%s1005_s1 + $0x28] sm:$0xff] }
  0x1b   : > { %764 = vmatmul.mubr.msk.f32.vlgmr.msra.gmra.mrb[0].mxu0 %vm162_vm0, %v146_v1  ;;  %v386_v9 = vsel %vm384_vm9, %v148_v7, 0  ;;  %v156_v7 = vld [vmem:[%s1005_s1 + $0x30] sm:$0xff] }
  0x1c   : > { %774 = vmatprep.mubr.msk.bf16.mxu0 %vm837_vm10, %v836_v42  ;;  %767 = vmatpush3.bf16.msra.mxu1 %v386_v9  ;;  %v159_v9 = vpack.c.bf16 %v156_v7, %v155_v6 }
  0x1d   : > { %778 = vmatprep.subr.bf16.mxu1 %v836_v42 }
  0x1f   : > { %769 = vmatmul.mubr.msk.bf16.vlgmr.msra.gmra.mrb[0].mxu1 %vm162_vm0, %v871_v2  ;;  %vm631_vm0 = vcmask 31744  }
  0x20   : > { %782 = vmatprep.mubr.msk.bf16.mxu1 %vm837_vm10, %v836_v42 }
  0xa1   : > { %v248_v20 = vpop.xlane.xlu0 %247 }
  0xa5   : > { %v251_v24 = vpop.xlane.xlu0 %250 }
  0xee   : > { %v765_v11 = vpop.f32.mrb[0].mxu0 }
  0xef   : > { %v260_v12 = vsel %vm258_vm2, %v765_v11, 0.0  ;;  %v235_v13 = vpop.f32.mrb[1].mxu0  ;;  %v274_v26 = vmul.f32 2.0, %v765_v11 }
  0xf0   : > { %v263_v14 = vsel %vm261_vm3, %v260_v12, 0.0  ;;  %v259_v15 = vsel %vm257_vm4, %v235_v13, 0.0  ;;  %v273_v27 = vmul.f32 2.0, %v235_v13 }
  0xf1   : > { %v262_v16 = vsel %vm261_vm3, %v259_v15, 0.0 }
  0xf2   : > { %v264_v17 = vadd.f32 %v263_v14, %v262_v16 }
  0xf4   : > { %v265_v18 = vrot.slane %v264_v17, 4 }
  0xf6   : > { %v266_v19 = vadd.f32 %v265_v18, %v264_v17 }
  0xf8   : > { %v267_v21 = vrot.slane %v266_v19, 2 }
  0xfa   : > { %v268_v22 = vadd.f32 %v267_v21, %v266_v19 }
  0xfc   : > { %v269_v23 = vrot.slane %v268_v22, 1 }
  0xfe   : > { %v270_v25 = vadd.f32 %v269_v23, %v268_v22 }
 0x100   : > { %v271_v28 = vadd.f32 %v270_v25, %v248_v20  ;;  %v272_v29 = vadd.f32 %v270_v25, %v251_v24 }
 0x102   : > { %v275_v30 = vsub.f32 %v271_v28, %v273_v27  ;;  %v276_v31 = vsub.f32 %v272_v29, %v274_v26 }
 0x104   : > { %v277_v32 = vadd.f32 1.0, %v275_v30  ;;  %v278_v33 = vadd.f32 1.0, %v276_v31 }
 0x106   : > { %v279_v34 = vsel %vm257_vm4, 1e+30, %v277_v32  ;;  %v280_v35 = vsel %vm258_vm2, 1e+30, %v278_v33  ;;  %v422_v33 = vpop.f32.mrb[0].mxu1 }
 0x107   : > { %v283_v36 = vand.u32 4294967280, %v279_v34  ;;  %v284_v37 = vand.u32 4294967280, %v280_v35  ;;  %v770_v34 = vpop.f32.mrb[1].mxu1 }
 0x108   : > { %v425_v35 = vpop.f32.mrb[2].mxu1 }
 0x109   : > { %v285_v38 = vor.u32 %v283_v36, %v882_v10  ;;  %v286_v40 = vor.u32 %v284_v37, %v882_v10  ;;  %v771_v36 = vpop.f32.mrb[3].mxu1 }
 0x10b   : > { %v293_v39 = vsel %vm261_vm3, %v285_v38, inf  ;;  %v296_v41 = vsel %vm261_vm3, %v286_v40, inf }
 0x10c   : > { %294 = vmin.xlane.f32.xlu1 %v293_v39 }
 0x110   : > { %297 = vmin.xlane.f32.xlu1 %v296_v41 }
 0x199   : > { %v295_v43 = vpop.xlane.xlu1 %294 }
 0x19a   : > { %v301_v44 = vand.u32 15, %v295_v43 }
 0x19c   : > { %vm303_vm5 = vcmp.eq.s32.totalorder %v882_v10, %v301_v44  ;;  %v149_v44 = vld [vmem:[%s1005_s1 + $0x8] sm:$0xff] }
 0x19d   : > { %v298_v46 = vpop.xlane.xlu1 %297  ;;  %v311_v47 = vsel %vm303_vm5, inf, %v285_v38  ;;  %v726_v48 = vsel %vm303_vm5, 1.0, %v836_v42 }
 0x19e   : > { %v302_v49 = vand.u32 15, %v298_v46  ;;  %v313_v50 = vsel %vm261_vm3, %v311_v47, inf  ;;  %v309_v51 = vadd.f32 %v726_v48, %v724_v45  ;;  %v150_v45 = vld [vmem:[%s1005_s1 + $0x10] sm:$0xff]  ;;  %v152_v48 = vld [vmem:[%s1005_s1 + $0x20] sm:$0xff] }
 0x19f   : > { %314 = vmin.xlane.f32.xlu0 %v313_v50  ;;  %v153_v46 = vpack.c.bf16 %v150_v45, %v149_v44  ;;  %v480_v50 = vsub.s32 0, %v879_v8 }
 0x1a0   : > { %vm304_vm6 = vcmp.eq.s32.totalorder %v882_v10, %v302_v49 }
 0x1a1   : > { %v312_v53 = vsel %vm304_vm6, inf, %v286_v40  ;;  %v727_v54 = vsel %vm304_vm6, 1.0, %v836_v42  ;;  %779 = vmatpush3.bf16.msra.mxu1 %v153_v46 }
 0x1a2   : > { %v316_v55 = vsel %vm261_vm3, %v312_v53, inf  ;;  %v310_v56 = vadd.f32 %v727_v54, %v725_v52  ;;  %780 = vmatprep.subr.bf16.mxu1 %v836_v42 }
 0x1a3   : > { %317 = vmin.xlane.f32.xlu1 %v316_v55 }
 0x22c   : > { %v315_v57 = vpop.xlane.xlu0 %314 }
 0x22d   : > { %v321_v58 = vand.u32 15, %v315_v57 }
 0x22f   : > { %vm323_vm7 = vcmp.eq.s32.totalorder %v882_v10, %v321_v58 }
 0x230   : > { %v318_v59 = vpop.xlane.xlu1 %317  ;;  %v331_v60 = vsel %vm323_vm7, inf, %v311_v47  ;;  %v728_v61 = vsel %vm323_vm7, 1.0, %v836_v42  ;;  %v151_v47 = vld [vmem:[%s1005_s1 + $0x18] sm:$0xff] }
 0x231   : > { %v322_v62 = vand.u32 15, %v318_v59  ;;  %v333_v63 = vsel %vm261_vm3, %v331_v60, inf  ;;  %v329_v0 = vadd.f32 %v728_v61, %v309_v51  ;;  %v154_v49 = vpack.c.bf16 %v152_v48, %v151_v47  ;;  %v161_v51 = vld [vmem:[%s1005_s1 + $0x48] sm:$0x7] }
 0x232   : > { %334 = vmin.xlane.f32.xlu0 %v333_v63  ;;  %v481_v54 = vrot.slane %v161_v51, %v480_v50 }
 0x233   : > { %vm324_vm8 = vcmp.eq.s32.totalorder %v882_v10, %v322_v62  ;;  %781 = vmatpush3.bf16.msra.mxu1 %v154_v49 }
 0x234   : > { %v332_v1 = vsel %vm324_vm8, inf, %v312_v53  ;;  %v729_v3 = vsel %vm324_vm8, 1.0, %v836_v42  ;;  %792 = vmatprep.subr.bf16.mxu1 %v836_v42 }
 0x235   : > { %v336_v4 = vsel %vm261_vm3, %v332_v1, inf  ;;  %v330_v5 = vadd.f32 %v729_v3, %v310_v56 }
 0x236   : > { %337 = vmin.xlane.f32.xlu1 %v336_v4 }
 0x2bf   : > { %v335_v11 = vpop.xlane.xlu0 %334 }
 0x2c0   : > { %v341_v12 = vand.u32 15, %v335_v11  ;;  %v157_v11 = vld [vmem:[%s1005_s1 + $0x38] sm:$0xff] }
 0x2c2   : > { %vm343_vm11 = vcmp.eq.s32.totalorder %v882_v10, %v341_v12  ;;  %v158_v12 = vld [vmem:[%s1005_s1 + $0x40] sm:$0xff] }
 0x2c3   : > { %v338_v13 = vpop.xlane.xlu1 %337  ;;  %v351_v14 = vsel %vm343_vm11, inf, %v331_v60  ;;  %v730_v15 = vsel %vm343_vm11, 1.0, %v836_v42 }
 0x2c4   : > { %v342_v16 = vand.u32 15, %v338_v13  ;;  %v353_v17 = vsel %vm261_vm3, %v351_v14, inf  ;;  %v349_v18 = vadd.f32 %v730_v15, %v329_v0  ;;  %v160_v13 = vpack.c.bf16 %v158_v12, %v157_v11 }
 0x2c5   : > { %354 = vmin.xlane.f32.xlu0 %v353_v17  ;;  %v578_v14 = vsub.s32 1, %v879_v8 }
 0x2c6   : > { %vm344_vm12 = vcmp.eq.s32.totalorder %v882_v10, %v342_v16 }
 0x2c7   : > { %v352_v19 = vsel %vm344_vm12, inf, %v332_v1  ;;  %v731_v2 = vsel %vm344_vm12, 1.0, %v836_v42  ;;  %v579_v17 = vrot.slane %v161_v51, %v578_v14 }
 0x2c8   : > { %v356_v20 = vsel %vm261_vm3, %v352_v19, inf  ;;  %v350_v21 = vadd.f32 %v731_v2, %v330_v5 }
 0x2c9   : > { %357 = vmin.xlane.f32.xlu1 %v356_v20 }
 0x352   : > { %v355_v22 = vpop.xlane.xlu0 %354 }
 0x353   : > { %v361_v23 = vand.u32 15, %v355_v22 }
 0x355   : > { %vm363_vm13 = vcmp.eq.s32.totalorder %v882_v10, %v361_v23  ;;  %v585_v23 = vsub.s32 2, %v879_v8 }
 0x356   : > { %v358_v24 = vpop.xlane.xlu1 %357  ;;  %v732_v25 = vsel %vm363_vm13, 1.0, %v836_v42 }
 0x357   : > { %v362_v26 = vand.u32 15, %v358_v24  ;;  %v369_v27 = vadd.f32 %v732_v25, %v349_v18  ;;  %v586_v24 = vrot.slane %v161_v51, %v585_v23 }
 0x359   : > { %vm364_vm14 = vcmp.eq.s32.totalorder %v882_v10, %v362_v26  ;;  %v371_v28 = vsel %vm261_vm3, %v369_v27, 0.0 }
 0x35a   : > { %372 = vadd.xlane.f32.xlu0 %v371_v28  ;;  %v733_v29 = vsel %vm364_vm14, 1.0, %v836_v42 }
 0x35b   : > { %v370_v30 = vadd.f32 %v733_v29, %v350_v21 }
 0x35d   : > { %v374_v31 = vsel %vm261_vm3, %v370_v30, 0.0  ;;  %v379_v32 = vpack.c.bf16 %v370_v30, %v369_v27 }
 0x35e   : > { %375 = vadd.xlane.f32.xlu1 %v374_v31 }
 0x3e7   : > { %v373_v37 = vpop.xlane.xlu0 %372 }
 0x3e8   : > { %816 = vrsqrt.f32 %v373_v37 }
 0x3eb   : > { %v376_v38 = vpop.xlane.xlu1 %375 }
 0x3ec   : > { %818 = vrsqrt.f32 %v376_v38 }
 0x3f2   : > { %v817_v39 = vpop.eup %816 }
 0x3f3   : > { %v429_v40 = vmul.f32 %v817_v39, %v422_v33 }
 0x3f6   : > { %v819_v10 = vpop.eup %818 }
 0x3f7   : > { %v430_v41 = vmul.f32 %v819_v10, %v425_v35 }
 0x3f9   : > { %v431_v43 = vpack.c.bf16 %v430_v41, %v429_v40 }
 0x3fb   : > { %773 = vmatpush3.bf16.msra.mxu0 %v431_v43 }
 0x3fc   : > { %786 = vmatprep.subr.bf16.mxu0 %v836_v42 }
 0x3fe   : > { %775 = vmatmul.mubr.msk.bf16.vlgmr.msra.gmra.mrb[4].mxu0 %vm261_vm3, %v379_v32 }
 0x3ff   : > { %788 = vmatprep.mubr.msk.bf16.mxu0 %vm837_vm10, %v836_v42 }
 0x4d1   : > { %v469_v52 = vpop.f32.mrb[4].mxu0 }
 0x4d2   : > { %v476_v53 = vmul.f32 %v817_v39, %v469_v52  ;;  %v776_v55 = vpop.f32.mrb[5].mxu0 }
 0x4d3   : > { %v472_v56 = vpop.f32.mrb[6].mxu0 }
 0x4d4   : > { %v477_v57 = vmul.f32 %v819_v10, %v472_v56  ;;  %v777_v58 = vpop.f32.mrb[7].mxu0  ;;  %v482_v59 = vadd.f32 %v481_v54, %v476_v53 }
 0x4d6   : > { %v483_v60 = vadd.f32 %v481_v54, %v477_v57 }
 0x4d8   : > { %v484_v61 = vpack.c.bf16 %v483_v60, %v482_v59 }
 0x4da   : > { %783 = vmatmul.mubr.msk.bf16.vlgmr.msra.gmra.mrb[4].mxu1 %vm485_vm15, %v484_v61 }
 0x4db   : > { %796 = vmatprep.mubr.msk.bf16.mxu1 %vm837_vm10, %v836_v42  ;;  %793 = vmatpush3.bf16.msra.mxu1 %v159_v9 }
 0x4dc   : > { %794 = vmatprep.subr.bf16.mxu1 %v836_v42 }
 0x4df   : > { %795 = vmatpush3.bf16.msra.mxu1 %v160_v13 }
 0x5ad   : > { %v523_v62 = vpop.f32.mrb[4].mxu1 }
 0x5ae   : > { %v784_v63 = vpop.f32.mrb[5].mxu1  ;;  %v530_v1 = vmul.f32 %v817_v39, %v523_v62 }
 0x5af   : > { %v526_v0 = vpop.f32.mrb[6].mxu1 }
 0x5b0   : > { %v531_v3 = vmul.f32 %v819_v10, %v526_v0  ;;  %v785_v4 = vpop.f32.mrb[7].mxu1 }
 0x5b2   : > { %v532_v5 = vpack.c.bf16 %v531_v3, %v530_v1 }
 0x5b4   : > { %787 = vmatpush3.bf16.msra.mxu0 %v532_v5 }
 0x5b7   : > { %789 = vmatmul.mubr.msk.bf16.vlgmr.msra.gmra.mrb[8].mxu0 %vm261_vm3, %v379_v32 }
 0x68a   : > { %v567_v15 = vpop.f32.mrb[8].mxu0 }
 0x68b   : > { %v574_v16 = vmul.f32 %v817_v39, %v567_v15  ;;  %v790_v18 = vpop.f32.mrb[9].mxu0 }
 0x68c   : > { %v570_v19 = vpop.f32.mrb[10].mxu0 }
 0x68d   : > { %v575_v2 = vmul.f32 %v819_v10, %v570_v19  ;;  %v791_v20 = vpop.f32.mrb[11].mxu0  ;;  %v580_v42 = vadd.f32 %v579_v17, %v574_v16 }
 0x68f   : > { %v581_v21 = vadd.f32 %v579_v17, %v575_v2 }
 0x691   : > { %v582_v22 = vpack.c.bf16 %v581_v21, %v580_v42 }
 0x693   : > { %797 = vmatmul.mubr.msk.bf16.vlgmr.msra.gmra.mrb[8].mxu1 %vm485_vm15, %v582_v22 }
 0x766   : > { %v624_v25 = vpop.f32.mrb[8].mxu1 }
 0x767   : > { %v625_v26 = vadd.f32 %v624_v25, %v586_v24  ;;  %v798_v27 = vpop.f32.mrb[9].mxu1 }
 0x768   : > { %v627_v28 = vpop.f32.mrb[10].mxu1 }
 0x769   : > { %v628_v29 = vadd.f32 %v627_v28, %v586_v24  ;;  %v799_v30 = vpop.f32.mrb[11].mxu1  ;;  %v632_v31 = vsel %vm631_vm0, %v625_v26, -inf }
 0x76a   : > { %633 = vmax.xlane.f32.xlu0 %v632_v31 }
 0x76b   : > { %v635_v32 = vsel %vm631_vm0, %v628_v29, -inf }
 0x76c   : > { %636 = vmax.xlane.f32.xlu1 %v635_v32 }
 0x7f7   : > { %v634_v33 = vpop.xlane.xlu0 %633 }
 0x7f8   : > { %v638_v34 = vsub.f32 %v625_v26, %v634_v33 }
 0x7f9   : > { %v637_v35 = vpop.xlane.xlu1 %636 }
 0x7fa   : > { %v640_v36 = vmul.f32 1.442695, %v638_v34  ;;  %v639_v8 = vsub.f32 %v628_v29, %v637_v35 }
 0x7fc   : > { %820 = vpow2.f32 %v640_v36  ;;  %v642_v37 = vmul.f32 1.442695, %v639_v8 }
 0x7fe   : > { %822 = vpow2.f32 %v642_v37 }
 0x806   : > { %v821_v38 = vpop.eup %820 }
 0x807   : > { %v644_v39 = vsel %vm631_vm0, %v821_v38, 0.0 }
 0x808   : > { %v823_v10 = vpop.eup %822  ;;  %645 = vadd.xlane.f32.xlu0 %v644_v39 }
 0x809   : > { %v647_v40 = vsel %vm631_vm0, %v823_v10, 0.0 }
 0x80a   : > { %648 = vadd.xlane.f32.xlu1 %v647_v40 }
 0x895   : > { %v646_v41 = vpop.xlane.xlu0 %645 }
 0x896   : > { %824 = vrcp.f32 %v646_v41 }
 0x897   : > { %v649_v43 = vpop.xlane.xlu1 %648 }
 0x898   : > { %826 = vrcp.f32 %v649_v43 }
 0x8a0   : > { %v825_v44 = vpop.eup %824 }
 0x8a1   : > { %v651_v45 = vmul.f32 %v825_v44, %v821_v38 }
 0x8a2   : > { %v827_v46 = vpop.eup %826 }
 0x8a3   : > { %654 = vst.msk [vmem:[%s143_s12] sm:$0xff] %vm631_vm0, %v651_v45  ;;  %v653_v47 = vmul.f32 %v827_v46, %v823_v10 }
 0x8a5   : > { %655 = vst.msk [vmem:[%s143_s12 + $0x8] sm:$0xff] %vm631_vm0, %v653_v47 }
 0x8a6 PF: > { %s12_s9 = sadd.s32 1, %s834_s9  }
 0x8a7   : > { %p9_p4 = scmp.ge.s32.totalorder %s12_s9, 6  }
 0x8a9   :  { %11 = sbr.rel (!%p9_p4) target bundleno = 1 (0x1), region = 58 }

</bundles_post_ra>
